<compile_context>
chip_gen: v6e
topology: v6e:2x2x1
jax: 0.10.0
libtpu: 0.0.40
codegen_flags: <defaults>
</compile_context>

<pallas_src>
import functools

import jax
import jax.numpy as jnp
from jax.experimental import pallas as pl
from jax.experimental.pallas import tpu as pltpu


def critic_kernel(x_ref, w1_ref, b1_ref, w2_ref, b2_ref, w3_ref, b3_ref, o_ref,
                  *, chunk, n_chunks):
    # x_ref: (S_pad, TILE_B) f32 -- features on sublanes, batch on lanes.
    w1 = w1_ref[...]                                   # (64, S_pad) bf16 (MXU operand)
    b1 = b1_ref[...]                                   # (64, 1)  f32
    w2 = w2_ref[...]                                   # (128, 64) bf16 (MXU operand)
    b2 = b2_ref[...]                                   # (128, 1) f32
    w3 = w3_ref[...]                                   # (128, 1) f32
    b3 = b3_ref[...]                                   # (1, 1)   f32

    def compute_chunk(start):
        # fc1 on the MXU (K = S_pad = 8): bf16 operands, f32 accumulation.
        xb = x_ref[:, pl.ds(start, chunk)].astype(jnp.bfloat16)   # (S_pad, chunk)
        h1 = jnp.dot(w1, xb, preferred_element_type=jnp.float32)  # (64, chunk) f32
        h1 = jnp.maximum(h1 + b1, 0.0)

        # fc2 on the MXU: bf16 operands, f32 accumulation; bias/ReLU in f32.
        h2 = jnp.dot(w2, h1.astype(jnp.bfloat16),
                     preferred_element_type=jnp.float32)           # (128, chunk) f32
        h2 = jnp.maximum(h2 + b2, 0.0)

        # fc3 (128 -> 1): VPU multiply + XLU cross-sublane reduce; result is a
        # lane-dense (1, chunk) row -> unmasked full-lane store.
        val = jnp.sum(h2 * w3, axis=0, keepdims=True) + b3
        o_ref[:, pl.ds(start, chunk)] = val

    if n_chunks == 1:
        compute_chunk(0)
    else:
        @pl.loop(0, n_chunks)
        def _(c):
            compute_chunk(pl.multiple_of(c * chunk, chunk))


@functools.partial(jax.jit, static_argnames=("tile_b",))
def critic_forward(x, params, tile_b=1024):
    """x: (batch, state_dim) f32; params in PyTorch layout (W: (out,in), b: (out,))."""
    w1, b1, w2, b2, w3, b3 = params
    batch, state_dim = x.shape

    lane = 128
    s_pad = max(8, -(-state_dim // 8) * 8)

    # Minimum lane-aligned batch.
    b_pad = -(-batch // lane) * lane
    # DMA tile: big enough to amortize per-step overhead, never bigger than needed.
    tile_b = max(lane, min((tile_b // lane) * lane, b_pad))
    # v7x: when batch allows, keep >=2 grid steps so the "parallel" axis shards
    # across both TensorCores (no-op on single-TC v5e/v6e).
    if b_pad >= 2 * lane:
        tile_b = min(tile_b, max(lane, (b_pad // 2 // lane) * lane))
    padded = -(-batch // tile_b) * tile_b
    n_tiles = padded // tile_b
    # In-kernel lane chunk (bounds vreg live ranges); must divide tile_b.
    chunk = 256 if tile_b % 256 == 0 else 128
    n_chunks = tile_b // chunk

    # One-time operand layout plumbing (weights stay resident in VMEM).
    w1k = jnp.pad(w1, ((0, 0), (0, s_pad - state_dim))).astype(jnp.bfloat16)  # (64, S_pad)
    b1k = b1.reshape(-1, 1).astype(jnp.float32)            # (64, 1)
    w2k = w2.astype(jnp.bfloat16)                           # (128, 64)
    b2k = b2.reshape(-1, 1).astype(jnp.float32)             # (128, 1)
    w3k = w3.reshape(-1, 1).astype(jnp.float32)             # (128, 1)
    b3k = b3.reshape(1, 1).astype(jnp.float32)               # (1, 1)

    # Transposed, lane-dense x: features on sublanes (padded to S_pad), batch on lanes.
    # Single fused pad-of-transpose; upstream callers holding (state_dim, batch)
    # data can feed it directly and skip this.
    xt = jnp.pad(x.astype(jnp.float32).T,
                 ((0, s_pad - state_dim), (0, padded - batch)))

    resident = lambda a: pl.BlockSpec(a.shape, lambda i: (0, 0))
    kernel = functools.partial(critic_kernel, chunk=chunk, n_chunks=n_chunks)

    out = pl.pallas_call(
        kernel,
        out_shape=jax.ShapeDtypeStruct((1, padded), jnp.float32),
        grid=(n_tiles,),
        in_specs=[
            pl.BlockSpec((s_pad, tile_b), lambda i: (0, i)),   # x tile, re-DMA'd per step
            resident(w1k), resident(b1k),
            resident(w2k), resident(b2k),
            resident(w3k), resident(b3k),
        ],
        out_specs=pl.BlockSpec((1, tile_b), lambda i: (0, i)),
        compiler_params=pltpu.CompilerParams(
            dimension_semantics=("parallel",)),
    )(xt, w1k, b1k, w2k, b2k, w3k, b3k)

    return out[0, :batch].reshape(batch, 1)


def init_params(key, state_dim):
    """PyTorch-layout params (W: (out,in), b: (out,)), U[-1/sqrt(fan_in), +] init."""
    dims = [(state_dim, 64), (64, 128), (128, 1)]
    params = []
    for fan_in, fan_out in dims:
        key, kw, kb = jax.random.split(key, 3)
        bound = 1.0 / (fan_in ** 0.5)
        w = jax.random.uniform(kw, (fan_out, fan_in), jnp.float32, -bound, bound)
        b = jax.random.uniform(kb, (fan_out,), jnp.float32, -bound, bound)
        params += [w, b]
    return tuple(params)


def critic_ref(x, params):
    w1, b1, w2, b2, w3, b3 = params
    h1 = jnp.maximum(x @ w1.T + b1, 0.0)
    h2 = jnp.maximum(h1 @ w2.T + b2, 0.0)
    return h2 @ w3.T + b3


if __name__ == "__main__":
    key = jax.random.PRNGKey(0)
    state_dim = 4   # CartPole observation size

    params = init_params(jax.random.fold_in(key, 0), state_dim)

    # fc1/fc2 use bf16 MXU operands (f32 accumulation) -> bf16-level tolerance
    # vs the f32 PyTorch reference.
    tol = dict(atol=5e-2, rtol=5e-2)

    # Small test: single grid step, single in-kernel chunk.
    x_small = jax.random.normal(jax.random.fold_in(key, 1), (8, state_dim), jnp.float32)
    out_small = jax.block_until_ready(critic_forward(x_small, params))
    ref_small = critic_ref(x_small, params)
    assert out_small.shape == (8, 1), out_small.shape
    assert jnp.allclose(out_small, ref_small, **tol), (out_small, ref_small)

    # Larger test: multi-step grid, in-kernel chunk loop and batch padding.
    x_big = jax.random.normal(jax.random.fold_in(key, 2), (1100, state_dim), jnp.float32)
    out_big = jax.block_until_ready(critic_forward(x_big, params))
    ref_big = critic_ref(x_big, params)
    assert out_big.shape == (1100, 1), out_big.shape
    assert jnp.allclose(out_big, ref_big, **tol)

    print("KERNEL_OK")
</pallas_src>

<mosaic_0001>
module attributes {stable_mosaic.version = 11 : i64} {
  func.func @critic_kernel(%arg0: i32, %arg1: memref<8x128xf32, #tpu.memory_space<vmem>>, %arg2: memref<64x8xbf16, #tpu.memory_space<vmem>>, %arg3: memref<64x1xf32, #tpu.memory_space<vmem>>, %arg4: memref<128x64xbf16, #tpu.memory_space<vmem>>, %arg5: memref<128x1xf32, #tpu.memory_space<vmem>>, %arg6: memref<128x1xf32, #tpu.memory_space<vmem>>, %arg7: memref<1x1xf32, #tpu.memory_space<vmem>>, %arg8: memref<1x128xf32, #tpu.memory_space<vmem>>) attributes {dimension_semantics = [#tpu.dimension_semantics<parallel>], iteration_bounds = array<i64: 1>, scalar_prefetch = 0 : i64, scratch_operands = 0 : i64, tpu.core_type = #tpu.core_type<tc>, window_params = [{transform_indices = @transform_0, window_bounds = array<i64: 8, 128>}, {pipeline_mode = #tpu.pipeline_mode<synchronous>, transform_indices = @transform_1, window_bounds = array<i64: 64, 8>}, {pipeline_mode = #tpu.pipeline_mode<synchronous>, transform_indices = @transform_2, window_bounds = array<i64: 64, 1>}, {pipeline_mode = #tpu.pipeline_mode<synchronous>, transform_indices = @transform_3, window_bounds = array<i64: 128, 64>}, {pipeline_mode = #tpu.pipeline_mode<synchronous>, transform_indices = @transform_4, window_bounds = array<i64: 128, 1>}, {pipeline_mode = #tpu.pipeline_mode<synchronous>, transform_indices = @transform_5, window_bounds = array<i64: 128, 1>}, {pipeline_mode = #tpu.pipeline_mode<synchronous>, transform_indices = @transform_6, window_bounds = array<i64: 1, 1>}, {transform_indices = @transform_7, window_bounds = array<i64: 1, 128>}]} {
    %c0 = arith.constant 0 : index
    %c0_0 = arith.constant 0 : index
    %0 = vector.load %arg2[%c0, %c0_0] : memref<64x8xbf16, #tpu.memory_space<vmem>>, vector<64x8xbf16>
    %c0_1 = arith.constant 0 : index
    %c0_2 = arith.constant 0 : index
    %1 = vector.load %arg3[%c0_1, %c0_2] : memref<64x1xf32, #tpu.memory_space<vmem>>, vector<64x1xf32>
    %c0_3 = arith.constant 0 : index
    %c0_4 = arith.constant 0 : index
    %2 = vector.load %arg4[%c0_3, %c0_4] : memref<128x64xbf16, #tpu.memory_space<vmem>>, vector<128x64xbf16>
    %c0_5 = arith.constant 0 : index
    %c0_6 = arith.constant 0 : index
    %3 = vector.load %arg5[%c0_5, %c0_6] : memref<128x1xf32, #tpu.memory_space<vmem>>, vector<128x1xf32>
    %c0_7 = arith.constant 0 : index
    %c0_8 = arith.constant 0 : index
    %4 = vector.load %arg6[%c0_7, %c0_8] : memref<128x1xf32, #tpu.memory_space<vmem>>, vector<128x1xf32>
    %c0_9 = arith.constant 0 : index
    %c0_10 = arith.constant 0 : index
    %5 = vector.load %arg7[%c0_9, %c0_10] : memref<1x1xf32, #tpu.memory_space<vmem>>, vector<1x1xf32>
    %c0_11 = arith.constant 0 : index
    %c0_12 = arith.constant 0 : index
    %6 = vector.load %arg1[%c0_11, %c0_12] : memref<8x128xf32, #tpu.memory_space<vmem>>, vector<8x128xf32>
    %7 = arith.truncf %6 : vector<8x128xf32> to vector<8x128xbf16>
    %cst = arith.constant dense<0.000000e+00> : vector<64x128xf32>
    %8 = tpu.matmul %0, %7, %cst {dimension_numbers = #tpu.dot_dimension_numbers<[1], [0], [0], [1], [0, 0, 1, 1], [], []>} : vector<64x8xbf16>, vector<8x128xbf16>, vector<64x128xf32> -> vector<64x128xf32>
    %9 = vector.broadcast %1 : vector<64x1xf32> to vector<64x128xf32>
    %10 = arith.addf %8, %9 : vector<64x128xf32>
    %cst_13 = arith.constant 0.000000e+00 : f32
    %11 = vector.broadcast %cst_13 : f32 to vector<64x128xf32>
    %12 = arith.maximumf %10, %11 : vector<64x128xf32>
    %13 = arith.truncf %12 : vector<64x128xf32> to vector<64x128xbf16>
    %cst_14 = arith.constant dense<0.000000e+00> : vector<128x128xf32>
    %14 = tpu.matmul %2, %13, %cst_14 {dimension_numbers = #tpu.dot_dimension_numbers<[1], [0], [0], [1], [0, 0, 1, 1], [], []>} : vector<128x64xbf16>, vector<64x128xbf16>, vector<128x128xf32> -> vector<128x128xf32>
    %15 = vector.broadcast %3 : vector<128x1xf32> to vector<128x128xf32>
    %16 = arith.addf %14, %15 : vector<128x128xf32>
    %cst_15 = arith.constant 0.000000e+00 : f32
    %17 = vector.broadcast %cst_15 : f32 to vector<128x128xf32>
    %18 = arith.maximumf %16, %17 : vector<128x128xf32>
    %19 = vector.broadcast %4 : vector<128x1xf32> to vector<128x128xf32>
    %20 = arith.mulf %18, %19 : vector<128x128xf32>
    %cst_16 = arith.constant dense<0.000000e+00> : vector<128xf32>
    %21 = vector.multi_reduction <add>, %20, %cst_16 [0] : vector<128x128xf32> to vector<128xf32>
    %22 = vector.shape_cast %21 : vector<128xf32> to vector<1x128xf32>
    %23 = vector.broadcast %5 : vector<1x1xf32> to vector<1x128xf32>
    %24 = arith.addf %22, %23 : vector<1x128xf32>
    %c0_17 = arith.constant 0 : index
    %c0_18 = arith.constant 0 : index
    %25 = vector.load %arg8[%c0_17, %c0_18] : memref<1x128xf32, #tpu.memory_space<vmem>>, vector<1x128xf32>
    tpu.vector_store %arg8[%c0_17, %c0_18], %24 {strides = array<i32>} : memref<1x128xf32, #tpu.memory_space<vmem>>, vector<1x128xf32>,
    return
  }
  func.func @transform_0(%arg0: i32) -> (i32, i32) {
    %c0_i32 = arith.constant 0 : i32
    %c0_i32_0 = arith.constant 0 : i32
    return %c0_i32, %arg0 : i32, i32
  }
  func.func @transform_1(%arg0: i32) -> (i32, i32) {
    %c0_i32 = arith.constant 0 : i32
    %c0_i32_0 = arith.constant 0 : i32
    %c0_i32_1 = arith.constant 0 : i32
    return %c0_i32, %c0_i32_0 : i32, i32
  }
  func.func @transform_2(%arg0: i32) -> (i32, i32) {
    %c0_i32 = arith.constant 0 : i32
    %c0_i32_0 = arith.constant 0 : i32
    %c0_i32_1 = arith.constant 0 : i32
    return %c0_i32, %c0_i32_0 : i32, i32
  }
  func.func @transform_3(%arg0: i32) -> (i32, i32) {
    %c0_i32 = arith.constant 0 : i32
    %c0_i32_0 = arith.constant 0 : i32
    %c0_i32_1 = arith.constant 0 : i32
    return %c0_i32, %c0_i32_0 : i32, i32
  }
  func.func @transform_4(%arg0: i32) -> (i32, i32) {
    %c0_i32 = arith.constant 0 : i32
    %c0_i32_0 = arith.constant 0 : i32
    %c0_i32_1 = arith.constant 0 : i32
    return %c0_i32, %c0_i32_0 : i32, i32
  }
  func.func @transform_5(%arg0: i32) -> (i32, i32) {
    %c0_i32 = arith.constant 0 : i32
    %c0_i32_0 = arith.constant 0 : i32
    %c0_i32_1 = arith.constant 0 : i32
    return %c0_i32, %c0_i32_0 : i32, i32
  }
  func.func @transform_6(%arg0: i32) -> (i32, i32) {
    %c0_i32 = arith.constant 0 : i32
    %c0_i32_0 = arith.constant 0 : i32
    %c0_i32_1 = arith.constant 0 : i32
    return %c0_i32, %c0_i32_0 : i32, i32
  }
  func.func @transform_7(%arg0: i32) -> (i32, i32) {
    %c0_i32 = arith.constant 0 : i32
    %c0_i32_0 = arith.constant 0 : i32
    return %c0_i32, %arg0 : i32, i32
  }
}

</mosaic_0001>

<bundles_post_ra>
// kernel: critic_forward.1
= control target key start
LH: loop header
LB: loop body
LE: loop exit
PB: predicated region body
PF: predicated region fallthrough
CT: control target
= control target key end

     0   :  { %v739_v0 = vmov 0   ;;  %vm169_vm0 = vcmask 1043456   ;;  %vm156_vm1 = vcmask 64512   ;;  %vm370_vm2 = vcmask 523264   ;;  %s957_s0 = inlined_call_operand.vmem [shape: f32[8,128], index: 0, kind: input, shape index: {}]   ;;  %s958_s2 = inlined_call_operand.vmem [shape: f32[64,1], index: 2, kind: input, shape index: {}]   ;;  %s959_s1 = inlined_call_operand.vmem [shape: bf16[64,8], index: 1, kind: input, shape index: {}]   ;;  %s960_s6 = inlined_call_operand.<no memory space> [shape: f32[1,1], index: 6, kind: input, shape index: {}]   ;;  %s961_s4 = inlined_call_operand.vmem [shape: f32[128,1], index: 4, kind: input, shape index: {}]   ;;  %s962_s5 = inlined_call_operand.vmem [shape: f32[128,1], index: 5, kind: input, shape index: {}]   ;;  %s963_s3 = inlined_call_operand.vmem [shape: bf16[128,64], index: 3, kind: input, shape index: {}]   ;;  %s964_s7 = inlined_call_operand.vmem [shape: f32[1,128], index: 7, kind: output, shape index: {}]  }
   0x1   :  { %725 = vset.pattern.permute.xlu0 %v739_v0  ;;  %v94_v1 = vld [vmem:[%s957_s0] sm:$0xff]  ;;  %v43_v2 = vld [vmem:[%s958_s2 + $0x30] sm:$0xff]  ;;  %726 = vset.pattern.permute.xlu1 %v739_v0  ;;  %v12_v3 = vstv %s960_s6  ;;  %v44_v6 = vld [vmem:[%s958_s2 + $0x38] sm:$0xff] }
   0x2   :  { %v95_v4 = vpack.c.bf16 %v94_v1, %v94_v1  ;;  %128 = vperm.xlu0 %725, %v43_v2   ;;  %v727_v5 = vld [vmem:[%s959_s1] sm:$0xff]   ;;  %13 = vst [vmem:[#allocation2] sm:$0x1] %v12_v3  ;;  %v728_v8 = vld [vmem:[%s959_s1 + $0x8] sm:$0xff]   ;;  %v729_v10 = vld [vmem:[%s959_s1 + $0x10] sm:$0xff]  }
   0x3   :  { %683 = vmatprep.mubr.msk.bf16.mxu0 %vm156_vm1, %v727_v5  ;;  %v41_v9 = vld [vmem:[%s958_s2 + $0x20] sm:$0xff]  ;;  %v42_v11 = vld [vmem:[%s958_s2 + $0x28] sm:$0xff]  ;;  %v39_v12 = vld [vmem:[%s958_s2 + $0x10] sm:$0xff] }
   0x4   :  { %723 = vmatprep.subr.msk.bf16.mxu0 %vm169_vm0, %v95_v4  ;;  %v171_v7 = vsel %vm169_vm0, %v95_v4, 0  ;;  %118 = vperm.xlu1 %726, %v41_v9   ;;  %v40_v13 = vld [vmem:[%s958_s2 + $0x18] sm:$0xff]  ;;  %v37_v14 = vld [vmem:[%s958_s2] sm:$0xff]  ;;  %v38_v16 = vld [vmem:[%s958_s2 + $0x8] sm:$0xff] }
   0x5   :  { %682 = vmatpush3.bf16.msra.mxu0 %v171_v7  ;;  %v730_v15 = vld [vmem:[%s959_s1 + $0x18] sm:$0xff]   ;;  %v61_v17 = vld [vmem:[%s961_s4] sm:$0xff]  ;;  %v62_v18 = vld [vmem:[%s961_s4 + $0x8] sm:$0xff] }
   0x6   :  { %133 = vperm.xlu0 %725, %v44_v6   ;;  %v63_v19 = vld [vmem:[%s961_s4 + $0x10] sm:$0xff]  ;;  %v64_v20 = vld [vmem:[%s961_s4 + $0x18] sm:$0xff]  ;;  %v65_v21 = vld [vmem:[%s961_s4 + $0x20] sm:$0xff] }
   0x7   :  { %v66_v22 = vld [vmem:[%s961_s4 + $0x28] sm:$0xff]  ;;  %v77_v23 = vld [vmem:[%s962_s5] sm:$0xff]  ;;  %v79_v25 = vld [vmem:[%s962_s5 + $0x10] sm:$0xff] }
   0x8   :  { %684 = vmatmul.mubr.msk.bf16.vlgmr.msra.gmra.mxu0 %vm156_vm1, %v728_v8  ;;  %123 = vperm.xlu1 %726, %v42_v11   ;;  %v78_v24 = vld [vmem:[%s962_s5 + $0x8] sm:$0xff]  ;;  %v80_v26 = vld [vmem:[%s962_s5 + $0x18] sm:$0xff]  ;;  %v67_v27 = vld [vmem:[%s961_s4 + $0x30] sm:$0xff] }
   0x9   :  { %687 = vmatprep.mubr.msk.bf16.mxu0 %vm156_vm1, %v729_v10  ;;  %v81_v28 = vld [vmem:[%s962_s5 + $0x20] sm:$0xff]  ;;  %v68_v29 = vld [vmem:[%s961_s4 + $0x38] sm:$0xff]  ;;  %v82_v30 = vld [vmem:[%s962_s5 + $0x28] sm:$0xff] }
   0xa   :  { %108 = vperm.xlu0 %725, %v39_v12   ;;  %v69_v31 = vld [vmem:[%s961_s4 + $0x40] sm:$0xff]  ;;  %v83_v32 = vld [vmem:[%s962_s5 + $0x30] sm:$0xff]  ;;  %v70_v33 = vld [vmem:[%s961_s4 + $0x48] sm:$0xff] }
   0xb   :  { %v84_v34 = vld [vmem:[%s962_s5 + $0x38] sm:$0xff]  ;;  %v71_v35 = vld [vmem:[%s961_s4 + $0x50] sm:$0xff]  ;;  %v85_v36 = vld [vmem:[%s962_s5 + $0x40] sm:$0xff] }
   0xc   :  { %113 = vperm.xlu1 %726, %v40_v13   ;;  %v72_v37 = vld [vmem:[%s961_s4 + $0x58] sm:$0xff]  ;;  %v86_v38 = vld [vmem:[%s962_s5 + $0x48] sm:$0xff]  ;;  %v73_v39 = vld [vmem:[%s961_s4 + $0x60] sm:$0xff] }
   0xd   :  { %v87_v40 = vld [vmem:[%s962_s5 + $0x50] sm:$0xff]  ;;  %v74_v41 = vld [vmem:[%s961_s4 + $0x68] sm:$0xff]  ;;  %v88_v42 = vld [vmem:[%s962_s5 + $0x58] sm:$0xff] }
   0xe   :  { %98 = vperm.xlu0 %725, %v37_v14   ;;  %v75_v43 = vld [vmem:[%s961_s4 + $0x70] sm:$0xff]  ;;  %v89_v44 = vld [vmem:[%s962_s5 + $0x60] sm:$0xff]  ;;  %v76_v45 = vld [vmem:[%s961_s4 + $0x78] sm:$0xff] }
   0xf   :  { %v90_v46 = vld [vmem:[%s962_s5 + $0x68] sm:$0xff]  ;;  %v91_v47 = vld [vmem:[%s962_s5 + $0x70] sm:$0xff]  ;;  %v92_v48 = vld [vmem:[%s962_s5 + $0x78] sm:$0xff] }
  0x10   :  { %688 = vmatmul.mubr.msk.bf16.gmra.mxu0 %vm156_vm1, %v730_v15  ;;  %103 = vperm.xlu1 %726, %v38_v16   ;;  %v93_v49 = vld [vmem:[#allocation2] sm:$0x1]  ;;  %v732_v51 = vld [vmem:[%s963_s3 + $0x10] sm:$0xff]  }
  0x11   :  { %v731_v50 = vld [vmem:[%s963_s3] sm:$0xff]   ;;  %703 = vmatprep.mubr.msk.bf16.mxu1 %vm370_vm2, %v732_v51 }
  0x12   :  { %252 = vperm.xlu0 %725, %v61_v17   ;;  %699 = vmatprep.mubr.msk.bf16.mxu0 %vm370_vm2, %v731_v50 }
  0x14   :  { %257 = vperm.xlu1 %726, %v62_v18  }
  0x16   :  { %262 = vperm.xlu0 %725, %v63_v19  }
  0x18   :  { %267 = vperm.xlu1 %726, %v64_v20  }
  0x1a   :  { %272 = vperm.xlu0 %725, %v65_v21  }
  0x1c   :  { %277 = vperm.xlu1 %726, %v66_v22  }
  0x1e   :  { %510 = vperm.xlu0 %725, %v77_v23  }
  0x20   :  { %515 = vperm.xlu1 %726, %v78_v24   ;;  %v733_v24 = vld [vmem:[%s963_s3 + $0x8] sm:$0xff]  }
  0x22   :  { %520 = vperm.xlu0 %725, %v79_v25   ;;  %v734_v25 = vld [vmem:[%s963_s3 + $0x18] sm:$0xff]  }
  0x24   :  { %525 = vperm.xlu1 %726, %v80_v26   ;;  %v735_v26 = vld [vmem:[%s963_s3 + $0x20] sm:$0xff]  }
  0x26   :  { %282 = vperm.xlu0 %725, %v67_v27   ;;  %v736_v27 = vld [vmem:[%s963_s3 + $0x28] sm:$0xff]  }
  0x28   :  { %530 = vperm.xlu1 %726, %v81_v28   ;;  %v737_v28 = vld [vmem:[%s963_s3 + $0x30] sm:$0xff]  }
  0x2a   :  { %287 = vperm.xlu0 %725, %v68_v29   ;;  %v738_v29 = vld [vmem:[%s963_s3 + $0x38] sm:$0xff]  }
  0x2c   :  { %535 = vperm.xlu1 %726, %v82_v30  }
  0x2e   :  { %292 = vperm.xlu0 %725, %v69_v31  }
  0x30   :  { %540 = vperm.xlu1 %726, %v83_v32  }
  0x32   :  { %297 = vperm.xlu0 %725, %v70_v33  }
  0x34   :  { %545 = vperm.xlu1 %726, %v84_v34  }
  0x36   :  { %302 = vperm.xlu0 %725, %v71_v35  }
  0x38   :  { %550 = vperm.xlu1 %726, %v85_v36  }
  0x3a   :  { %307 = vperm.xlu0 %725, %v72_v37  }
  0x3c   :  { %555 = vperm.xlu1 %726, %v86_v38  }
  0x3e   :  { %312 = vperm.xlu0 %725, %v73_v39  }
  0x40   :  { %560 = vperm.xlu1 %726, %v87_v40  }
  0x42   :  { %317 = vperm.xlu0 %725, %v74_v41  }
  0x44   :  { %565 = vperm.xlu1 %726, %v88_v42  }
  0x46   :  { %322 = vperm.xlu0 %725, %v75_v43  }
  0x48   :  { %570 = vperm.xlu1 %726, %v89_v44  }
  0x4a   :  { %327 = vperm.xlu0 %725, %v76_v45  }
  0x4c   :  { %575 = vperm.xlu1 %726, %v90_v46  }
  0x4e   :  { %580 = vperm.xlu0 %725, %v91_v47  }
  0x50   :  { %585 = vperm.xlu1 %726, %v92_v48  }
  0x52   :  { %627 = vperm.xlu0 %725, %v93_v49  }
  0x7d   :  { %v129_v54 = vpop.permute.xlu0 %128 }
  0x7f   :  { %v119_v52 = vpop.permute.xlu1 %118 }
  0x81   :  { %v134_v59 = vpop.permute.xlu0 %133 }
  0x83   :  { %v124_v57 = vpop.permute.xlu1 %123 }
  0x85   :  { %v109_v3 = vpop.permute.xlu0 %108 }
  0x87   :  { %v114_v63 = vpop.permute.xlu1 %113 }
  0x89   :  { %v99_v17 = vpop.permute.xlu0 %98 }
  0x8b   :  { %v104_v13 = vpop.permute.xlu1 %103 }
  0x8d   :  { %v253_v30 = vpop.permute.xlu0 %252 }
  0x8f   :  { %v258_v31 = vpop.permute.xlu1 %257 }
  0x91   :  { %v263_v32 = vpop.permute.xlu0 %262 }
  0x93   :  { %v268_v33 = vpop.permute.xlu1 %267 }
  0x95   :  { %v273_v34 = vpop.permute.xlu0 %272 }
  0x97   :  { %v278_v35 = vpop.permute.xlu1 %277 }
  0x99   :  { %v511_v36 = vpop.permute.xlu0 %510 }
  0x9b   :  { %v516_v37 = vpop.permute.xlu1 %515 }
  0x9d   :  { %v521_v38 = vpop.permute.xlu0 %520 }
  0x9f   :  { %v526_v39 = vpop.permute.xlu1 %525 }
  0xa1   :  { %v283_v40 = vpop.permute.xlu0 %282 }
  0xa3   :  { %v531_v41 = vpop.permute.xlu1 %530 }
  0xa5   :  { %v288_v42 = vpop.permute.xlu0 %287 }
  0xa7   :  { %v536_v43 = vpop.permute.xlu1 %535 }
  0xa9   :  { %v293_v44 = vpop.permute.xlu0 %292 }
  0xab   :  { %v541_v45 = vpop.permute.xlu1 %540 }
  0xad   :  { %v298_v46 = vpop.permute.xlu0 %297 }
  0xaf   :  { %v546_v47 = vpop.permute.xlu1 %545 }
  0xb1   :  { %v303_v48 = vpop.permute.xlu0 %302 }
  0xb3   :  { %v551_v51 = vpop.permute.xlu1 %550 }
  0xc8   :  { %v685_v53 = vpop.f32.mrf.mxu0 }
  0xc9   :  { %v216_v9 = vadd.f32 %v685_v53, %v109_v3 }
  0xca   :  { %v207_v55 = vpop.f32.mrf.mxu0 }
  0xcb   :  { %v240_v18 = vmax.f32 %v216_v9, 0.0  ;;  %v208_v19 = vadd.f32 %v207_v55, %v99_v17 }
  0xcc   :  { %v686_v56 = vpop.f32.mrf.mxu0 }
  0xcd   :  { %v219_v5 = vadd.f32 %v686_v56, %v114_v63  ;;  %v238_v22 = vmax.f32 %v208_v19, 0.0 }
  0xce   :  { %v210_v58 = vpop.f32.mrf.mxu0 }
  0xcf   :  { %v241_v14 = vmax.f32 %v219_v5, 0.0  ;;  %v211_v15 = vadd.f32 %v210_v58, %v104_v13 }
  0xd0   :  { %v689_v60 = vpop.f32.mrf.mxu0 }
  0xd1   :  { %v232_v62 = vadd.f32 %v689_v60, %v129_v54  ;;  %v247_v20 = vpack.c.bf16 %v241_v14, %v240_v18  ;;  %v239_v21 = vmax.f32 %v211_v15, 0.0 }
  0xd2   :  { %v223_v61 = vpop.f32.mrf.mxu0 }
  0xd3   :  { %v224_v1 = vadd.f32 %v223_v61, %v119_v52  ;;  %v244_v6 = vmax.f32 %v232_v62, 0.0  ;;  %v246_v23 = vpack.c.bf16 %v239_v21, %v238_v22 }
  0xd4   :  { %v690_v0 = vpop.f32.mrf.mxu0 }
  0xd5   :  { %v235_v2 = vadd.f32 %v690_v0, %v134_v59  ;;  %v242_v10 = vmax.f32 %v224_v1, 0.0  ;;  %v556_v0 = vpop.permute.xlu1 %555 }
  0xd6   :  { %v226_v4 = vpop.f32.mrf.mxu0 }
  0xd7   :  { %v245_v7 = vmax.f32 %v235_v2, 0.0  ;;  %v227_v8 = vadd.f32 %v226_v4, %v124_v57  ;;  %v308_v57 = vpop.permute.xlu0 %307 }
  0xd9   :  { %v249_v11 = vpack.c.bf16 %v245_v7, %v244_v6  ;;  %v243_v12 = vmax.f32 %v227_v8, 0.0 }
  0xdb   :  { %v248_v16 = vpack.c.bf16 %v243_v12, %v242_v10  ;;  %691 = vmatprep.subr.bf16.mxu0 %v249_v11  ;;  %715 = vmatprep.subr.bf16.mxu1 %v249_v11  ;;  %v313_v10 = vpop.permute.xlu0 %312 }
  0xdc   :  { %692 = vmatpush3.bf16.msra.mxu0 %v249_v11  ;;  %719 = vmatpush3.bf16.msra.mxu1 %v249_v11 }
  0xdd   :  { %693 = vmatprep.subr.bf16.mxu0 %v248_v16  ;;  %716 = vmatprep.subr.bf16.mxu1 %v248_v16 }
  0xe0   :  { %694 = vmatpush3.bf16.msra.mxu0 %v248_v16  ;;  %720 = vmatpush3.bf16.msra.mxu1 %v248_v16  ;;  %v561_v16 = vpop.permute.xlu1 %560 }
  0xe1   :  { %695 = vmatprep.subr.bf16.mxu0 %v247_v20  ;;  %717 = vmatprep.subr.bf16.mxu1 %v247_v20 }
  0xe4   :  { %696 = vmatpush3.bf16.msra.mxu0 %v247_v20  ;;  %721 = vmatpush3.bf16.msra.mxu1 %v247_v20 }
  0xe5   :  { %697 = vmatprep.subr.bf16.mxu0 %v246_v23  ;;  %718 = vmatprep.subr.bf16.mxu1 %v246_v23 }
  0xe8   :  { %698 = vmatpush3.bf16.msra.mxu0 %v246_v23  ;;  %722 = vmatpush3.bf16.msra.mxu1 %v246_v23 }
  0xeb   :  { %700 = vmatmul.mubr.msk.bf16.vlgmr.msra.gmra.mxu0 %vm370_vm2, %v733_v24  ;;  %704 = vmatmul.mubr.msk.bf16.vlgmr.msra.gmra.mxu1 %vm370_vm2, %v734_v25 }
  0xec   :  { %707 = vmatprep.mubr.msk.bf16.mxu1 %vm370_vm2, %v735_v26 }
  0xf3   :  { %708 = vmatmul.mubr.msk.bf16.gmra.mxu1 %vm370_vm2, %v736_v27  ;;  %v318_v27 = vpop.permute.xlu0 %317 }
  0xf4   :  { %711 = vmatprep.mubr.msk.bf16.mxu1 %vm370_vm2, %v737_v28 }
  0xfb   :  { %712 = vmatmul.mubr.msk.bf16.gmra.mxu1 %vm370_vm2, %v738_v29 }
 0x1ab   :  { %v701_v49 = vpop.f32.mrf.mxu0  ;;  %v705_v50 = vpop.f32.mrf.mxu1 }
 0x1ac   :  { %v438_v58 = vadd.f32 %v701_v49, %v263_v32  ;;  %v454_v13 = vadd.f32 %v705_v50, %v283_v40  ;;  %v323_v50 = vpop.permute.xlu0 %322 }
 0x1ad   :  { %v429_v52 = vpop.f32.mrf.mxu0  ;;  %v445_v53 = vpop.f32.mrf.mxu1 }
 0x1ae   :  { %v430_v54 = vadd.f32 %v429_v52, %v253_v30  ;;  %v494_v2 = vmax.f32 %v438_v58, 0.0  ;;  %v446_v3 = vadd.f32 %v445_v53, %v273_v34  ;;  %v498_v23 = vmax.f32 %v454_v13, 0.0 }
 0x1af   :  { %v702_v55 = vpop.f32.mrf.mxu0  ;;  %v706_v56 = vpop.f32.mrf.mxu1 }
 0x1b0   :  { %v492_v61 = vmax.f32 %v430_v54, 0.0  ;;  %v441_v62 = vadd.f32 %v702_v55, %v268_v33  ;;  %v590_v12 = vmul.f32 %v521_v38, %v494_v2  ;;  %v496_v14 = vmax.f32 %v446_v3, 0.0  ;;  %v566_v33 = vpop.permute.xlu1 %565 }
 0x1b1   :  { %v432_v59 = vpop.f32.mrf.mxu0  ;;  %v448_v60 = vpop.f32.mrf.mxu1  ;;  %v457_v19 = vadd.f32 %v706_v56, %v288_v42 }
 0x1b2   :  { %v433_v63 = vadd.f32 %v432_v59, %v258_v31  ;;  %v588_v6 = vmul.f32 %v511_v36, %v492_v61  ;;  %v495_v7 = vmax.f32 %v441_v62, 0.0  ;;  %v449_v9 = vadd.f32 %v448_v60, %v278_v35  ;;  %v328_v61 = vpop.permute.xlu0 %327 }
 0x1b3   :  { %v709_v1 = vpop.f32.mrf.mxu1  ;;  %v592_v24 = vmul.f32 %v531_v41, %v496_v14  ;;  %v499_v29 = vmax.f32 %v457_v19, 0.0  ;;  %v594_v35 = vmul.f32 %v541_v45, %v498_v23 }
 0x1b4   :  { %v493_v4 = vmax.f32 %v433_v63, 0.0  ;;  %v591_v18 = vmul.f32 %v526_v39, %v495_v7  ;;  %v497_v21 = vmax.f32 %v449_v9, 0.0  ;;  %v571_v55 = vpop.permute.xlu1 %570 }
 0x1b5   :  { %v461_v5 = vpop.f32.mrf.mxu1  ;;  %v595_v39 = vmul.f32 %v546_v47, %v499_v29 }
 0x1b6   :  { %v589_v8 = vmul.f32 %v516_v37, %v493_v4  ;;  %v462_v26 = vadd.f32 %v461_v5, %v293_v44  ;;  %v593_v30 = vmul.f32 %v536_v43, %v497_v21  ;;  %v470_v37 = vadd.f32 %v709_v1, %v303_v48  ;;  %v581_v7 = vpop.permute.xlu0 %580 }
 0x1b7   :  { %v710_v11 = vpop.f32.mrf.mxu1 }
 0x1b8   :  { %v604_v15 = vadd.f32 %v589_v8, %v588_v6  ;;  %v500_v38 = vmax.f32 %v462_v26, 0.0  ;;  %v473_v42 = vadd.f32 %v710_v11, %v308_v57  ;;  %v502_v52 = vmax.f32 %v470_v37, 0.0  ;;  %v576_v1 = vpop.permute.xlu1 %575 }
 0x1b9   :  { %v464_v17 = vpop.f32.mrf.mxu1 }
 0x1ba   :  { %v605_v20 = vadd.f32 %v604_v15, %v590_v12  ;;  %v465_v32 = vadd.f32 %v464_v17, %v298_v46  ;;  %v596_v44 = vmul.f32 %v551_v51, %v500_v38  ;;  %v503_v56 = vmax.f32 %v473_v42, 0.0 }
 0x1bb   :  { %v713_v22 = vpop.f32.mrf.mxu1  ;;  %v598_v59 = vmul.f32 %v561_v16, %v502_v52  ;;  %v630_v12 = vlaneseq }
 0x1bc   :  { %v606_v25 = vadd.f32 %v605_v20, %v591_v18  ;;  %v501_v49 = vmax.f32 %v465_v32, 0.0  ;;  %v486_v60 = vadd.f32 %v713_v22, %v323_v50  ;;  %v599_v47 = vmul.f32 %v566_v33, %v503_v56  ;;  %v586_v9 = vpop.permute.xlu1 %585  ;;  %v628_v20 = vpop.permute.xlu0 %627 }
 0x1bd   :  { %v477_v28 = vpop.f32.mrf.mxu1  ;;  %v631_v15 = vshrl.u32 %v630_v12, 7 }
 0x1be   :  { %v607_v31 = vadd.f32 %v606_v25, %v592_v24  ;;  %v478_v54 = vadd.f32 %v477_v28, %v313_v10  ;;  %v597_v46 = vmul.f32 %v556_v0, %v501_v49  ;;  %v506_v2 = vmax.f32 %v486_v60, 0.0 }
 0x1bf   :  { %v714_v34 = vpop.f32.mrf.mxu1  ;;  %v632_v18 = vsub.s32 0, %v631_v15 }
 0x1c0   :  { %v608_v36 = vadd.f32 %v607_v31, %v593_v30  ;;  %v504_v48 = vmax.f32 %v478_v54, 0.0  ;;  %v489_v57 = vadd.f32 %v714_v34, %v328_v61  ;;  %v602_v8 = vmul.f32 %v581_v7, %v506_v2 }
 0x1c1   :  { %v480_v41 = vpop.f32.mrf.mxu1  ;;  %v633_v22 = vrot.slane %v628_v20, %v632_v18 }
 0x1c2   :  { %v609_v40 = vadd.f32 %v608_v36, %v594_v35  ;;  %v481_v58 = vadd.f32 %v480_v41, %v318_v27  ;;  %v600_v3 = vmul.f32 %v571_v55, %v504_v48  ;;  %v507_v5 = vmax.f32 %v489_v57, 0.0 }
 0x1c4   :  { %v610_v53 = vadd.f32 %v609_v40, %v595_v39  ;;  %v505_v63 = vmax.f32 %v481_v58, 0.0  ;;  %v603_v10 = vmul.f32 %v586_v9, %v507_v5 }
 0x1c6   :  { %v611_v43 = vadd.f32 %v610_v53, %v596_v44  ;;  %v601_v6 = vmul.f32 %v576_v1, %v505_v63 }
 0x1c8   :  { %v612_v45 = vadd.f32 %v611_v43, %v597_v46 }
 0x1ca   :  { %v613_v62 = vadd.f32 %v612_v45, %v598_v59 }
 0x1cc   :  { %v614_v51 = vadd.f32 %v613_v62, %v599_v47 }
 0x1ce   :  { %v615_v4 = vadd.f32 %v614_v51, %v600_v3 }
 0x1d0   :  { %v616_v0 = vadd.f32 %v615_v4, %v601_v6 }
 0x1d2   :  { %v617_v11 = vadd.f32 %v616_v0, %v602_v8 }
 0x1d4   :  { %v618_v13 = vadd.f32 %v617_v11, %v603_v10 }
 0x1d6   :  { %v619_v14 = vrot.slane %v618_v13, 4 }
 0x1d8   :  { %v620_v16 = vadd.f32 %v619_v14, %v618_v13 }
 0x1da   :  { %v621_v17 = vrot.slane %v620_v16, 2 }
 0x1dc   :  { %v622_v19 = vadd.f32 %v621_v17, %v620_v16 }
 0x1de   :  { %v623_v21 = vrot.slane %v622_v19, 1 }
 0x1e0   :  { %v624_v23 = vadd.f32 %v623_v21, %v622_v19 }
 0x1e2   :  { %v634_v24 = vadd.f32 %v633_v22, %v624_v23 }
 0x1e4   :  { %635 = vst [vmem:[%s964_s7] sm:$0x1] %v634_v24 }

</bundles_post_ra>
